<compile_context>
chip_gen: v7x
topology: tpu7x:2x2x1
jax: 0.10.0
libtpu: 0.0.40
codegen_flags: <defaults>
</compile_context>

<pallas_src>
import math
from typing import Any, Dict, List

import numpy as np
import jax
import jax.numpy as jnp
from jax import lax
from jax.experimental import pallas as pl
from jax.experimental.pallas import tpu as pltpu

# ---- model dims (small, config-overridable like the PyTorch module) ---------
EMBEDDING_DIM = 128            # config['embedding_dim']
HIDDEN_DIM = 256               # config['hidden_dim']
POS_HIDDEN = 256               # hard-coded 256 in position_head
NUM_ACTIONS = 5                # action_head output
NUM_COORDS = 2                 # position_head output
PAD = 128                      # lane padding for the tiny head outputs

AP1 = PAD + POS_HIDDEN                         # 384: fused [action | pos-L1] cols
WBIG_COLS = HIDDEN_DIM + AP1 + PAD             # 768: [w2 | wa | wp1 | wp2]
BIAS_COLS = 2 * HIDDEN_DIM + AP1 + PAD         # 1024: [b1 | b2 | ba | bp1 | bp2]
OUT_COLS = 2 * PAD                             # 256: [probs | positions]

ACTIONS = ["tap", "swipe_up", "swipe_down", "swipe_left", "swipe_right"]


def _gelu_exact(x):
    # PyTorch nn.GELU() default = exact erf formulation.
    return 0.5 * x * (1.0 + lax.erf(x * (1.0 / math.sqrt(2.0))))


def _mobile_action_kernel(
    x_ref,        # (TM, E)          f32
    w1_ref,       # (E, H)           bf16
    wbig_ref,     # (H, 768)         bf16  = [w2 | wa(128-pad) | wp1 | wp2(128-pad)]
    bias_ref,     # (1, 1024)        f32   = [b1 | b2 | ba(-1e9 pad) | bp1 | bp2]
    out_ref,      # (TM, 256)        f32   = [softmax probs (128) | sigmoid pos (128)]
):
    H = HIDDEN_DIM
    x = x_ref[...].astype(jnp.bfloat16)

    b1 = bias_ref[:, 0:H]
    b2 = bias_ref[:, H:2 * H]
    b_ap1 = bias_ref[:, 2 * H:2 * H + AP1]
    bp2 = bias_ref[:, 2 * H + AP1:2 * H + AP1 + PAD]

    # shared_layers: Linear -> GELU -> Linear -> GELU  (f32 accumulation)
    h1 = jnp.dot(x, w1_ref[...], preferred_element_type=jnp.float32) + b1
    h1 = _gelu_exact(h1)
    h2 = jnp.dot(h1.astype(jnp.bfloat16), wbig_ref[:, 0:H],
                 preferred_element_type=jnp.float32) + b2
    feats = _gelu_exact(h2)

    # fused action_head + position_head layer-1 (single MXU push on packed cols)
    ap1 = jnp.dot(feats.astype(jnp.bfloat16), wbig_ref[:, H:H + AP1],
                  preferred_element_type=jnp.float32) + b_ap1
    logits = ap1[:, 0:PAD]                     # padded lanes carry bias -1e9
    p1 = _gelu_exact(ap1[:, PAD:AP1])

    # softmax over padded logits (EUP reciprocal for the denominator)
    m = jnp.max(logits, axis=-1, keepdims=True)
    e = jnp.exp(logits - m)
    inv = pl.reciprocal(jnp.sum(e, axis=-1, keepdims=True), approx=True)
    out_ref[:, 0:PAD] = e * inv

    # position_head layer-2 + sigmoid
    p2 = jnp.dot(p1.astype(jnp.bfloat16), wbig_ref[:, H + AP1:WBIG_COLS],
                 preferred_element_type=jnp.float32) + bp2
    out_ref[:, PAD:OUT_COLS] = jax.nn.sigmoid(p2)


def _round_up(n, m):
    return ((n + m - 1) // m) * m


def mobile_action_forward(x, params):
    """Fused MLP forward.

    x: (B, EMBEDDING_DIM) f32.
    Returns (B, 256) f32: lanes [0:NUM_ACTIONS] softmax probs,
    lanes [PAD:PAD+NUM_COORDS] sigmoid positions.  Other lanes are padding.
    """
    B = x.shape[0]
    pb = max(_round_up(B, 8), 8)
    tm = pb if pb <= 256 else 256          # one tile up to MXU height, else tile
    pb = _round_up(pb, tm)
    if pb != B:
        x = jnp.pad(x, ((0, pb - B), (0, 0)))

    out = pl.pallas_call(
        _mobile_action_kernel,
        out_shape=jax.ShapeDtypeStruct((pb, OUT_COLS), jnp.float32),
        grid=(pb // tm,),
        in_specs=[
            pl.BlockSpec((tm, EMBEDDING_DIM), lambda i: (i, 0)),
            pl.BlockSpec((EMBEDDING_DIM, HIDDEN_DIM), lambda i: (0, 0)),
            pl.BlockSpec((HIDDEN_DIM, WBIG_COLS), lambda i: (0, 0)),
            pl.BlockSpec((1, BIAS_COLS), lambda i: (0, 0)),
        ],
        out_specs=pl.BlockSpec((tm, OUT_COLS), lambda i: (i, 0)),
        compiler_params=pltpu.CompilerParams(
            dimension_semantics=("parallel",)),
    )(x, params["w1"], params["w_big"], params["bias"])
    return out[:B]


_forward_jit = jax.jit(mobile_action_forward)


def init_params(key):
    """Deterministic synthetic parameters (same shapes as the nn.Module),
    packed for the fused kernel."""
    ks = jax.random.split(key, 10)

    def lin(kw, kb, fan_in, fan_out, pad_out=None, pad_bias_val=0.0):
        # kaiming-uniform-ish like torch Linear default; weight stored (in, out)
        bound = 1.0 / math.sqrt(fan_in)
        w = jax.random.uniform(kw, (fan_in, fan_out), jnp.float32, -bound, bound)
        b = jax.random.uniform(kb, (1, fan_out), jnp.float32, -bound, bound)
        if pad_out is not None and pad_out > fan_out:
            w = jnp.pad(w, ((0, 0), (0, pad_out - fan_out)))
            b = jnp.pad(b, ((0, 0), (0, pad_out - fan_out)),
                        constant_values=pad_bias_val)
        return w, b

    w1, b1 = lin(ks[0], ks[1], EMBEDDING_DIM, HIDDEN_DIM)
    w2, b2 = lin(ks[2], ks[3], HIDDEN_DIM, HIDDEN_DIM)
    # action head: pad 5 -> 128 lanes, padded bias = -1e9 so softmax ignores them
    wa, ba = lin(ks[4], ks[5], HIDDEN_DIM, NUM_ACTIONS, pad_out=PAD,
                 pad_bias_val=-1e9)
    wp1, bp1 = lin(ks[6], ks[7], HIDDEN_DIM, POS_HIDDEN)
    wp2, bp2 = lin(ks[8], ks[9], POS_HIDDEN, NUM_COORDS, pad_out=PAD)

    # pack: all H-row weights into one slab, all biases into one lane row
    w_big = jnp.concatenate([w2, wa, wp1, wp2], axis=1)       # (256, 768)
    bias = jnp.concatenate([b1, b2, ba, bp1, bp2], axis=1)    # (1, 1024)

    return dict(
        w1=w1.astype(jnp.bfloat16),
        w_big=w_big.astype(jnp.bfloat16),
        bias=bias.astype(jnp.float32),
    )


def mobile_action_model(integrated_embedding, params) -> List[Dict[str, Any]]:
    """Python glue reproducing MobileActionModel.forward's action-dict output."""
    x = jnp.asarray(integrated_embedding, jnp.float32).reshape(1, EMBEDDING_DIM)
    out = jax.block_until_ready(_forward_jit(x, params))
    # single 1 KiB device->host transfer; argmax/coords decoded on host
    # TODO(synk): argmax-driven Python branching + dict construction stay on host.
    row = np.asarray(out[0])

    action_type_idx = int(np.argmax(row[:NUM_ACTIONS]))
    chosen_action = ACTIONS[action_type_idx % len(ACTIONS)]

    if chosen_action == "tap":
        x_c = float(row[PAD + 0])
        y_c = float(row[PAD + 1])
        return [{"type": "touch", "action": "tap",
                 "position": {"x": x_c, "y": y_c}}]
    elif chosen_action == "swipe_up":
        return [{"type": "swipe", "action": "swipe",
                 "start": {"x": 0.5, "y": 0.7}, "end": {"x": 0.5, "y": 0.3},
                 "duration": 0.3}]
    elif chosen_action == "swipe_down":
        return [{"type": "swipe", "action": "swipe",
                 "start": {"x": 0.5, "y": 0.3}, "end": {"x": 0.5, "y": 0.7},
                 "duration": 0.3}]
    elif chosen_action == "swipe_left":
        return [{"type": "swipe", "action": "swipe",
                 "start": {"x": 0.7, "y": 0.5}, "end": {"x": 0.3, "y": 0.5},
                 "duration": 0.3}]
    else:  # swipe_right
        return [{"type": "swipe", "action": "swipe",
                 "start": {"x": 0.3, "y": 0.5}, "end": {"x": 0.7, "y": 0.5},
                 "duration": 0.3}]


if __name__ == "__main__":
    key = jax.random.PRNGKey(0)
    pkey, xkey = jax.random.split(key)
    params = init_params(pkey)

    # single integrated vision-language embedding (as the nn.Module's forward implies)
    integrated_embedding = jax.random.normal(xkey, (EMBEDDING_DIM,), jnp.float32)
    actions = mobile_action_model(integrated_embedding, params)
    assert isinstance(actions, list) and len(actions) == 1 and "type" in actions[0]

    # batched path: amortizes launch/DMA over many rows (MXU-friendly M)
    xb = jax.random.normal(xkey, (32, EMBEDDING_DIM), jnp.float32)
    outb = jax.block_until_ready(_forward_jit(xb, params))
    assert outb.shape == (32, OUT_COLS)
    probs_sum = float(jnp.sum(outb[0, :NUM_ACTIONS]))
    assert abs(probs_sum - 1.0) < 1e-2, probs_sum

    print("KERNEL_OK")
</pallas_src>

<mosaic_0001>
module attributes {stable_mosaic.version = 11 : i64} {
  func.func @_mobile_action_kernel(%arg0: i32, %arg1: memref<8x128xf32, #tpu.memory_space<vmem>>, %arg2: memref<128x256xbf16, #tpu.memory_space<vmem>>, %arg3: memref<256x768xbf16, #tpu.memory_space<vmem>>, %arg4: memref<1x1024xf32, #tpu.memory_space<vmem>>, %arg5: memref<8x256xf32, #tpu.memory_space<vmem>>) attributes {dimension_semantics = [#tpu.dimension_semantics<parallel>], iteration_bounds = array<i64: 1>, scalar_prefetch = 0 : i64, scratch_operands = 0 : i64, tpu.core_type = #tpu.core_type<tc>, window_params = [{transform_indices = @transform_0, window_bounds = array<i64: 8, 128>}, {pipeline_mode = #tpu.pipeline_mode<synchronous>, transform_indices = @transform_1, window_bounds = array<i64: 128, 256>}, {pipeline_mode = #tpu.pipeline_mode<synchronous>, transform_indices = @transform_2, window_bounds = array<i64: 256, 768>}, {pipeline_mode = #tpu.pipeline_mode<synchronous>, transform_indices = @transform_3, window_bounds = array<i64: 1, 1024>}, {transform_indices = @transform_4, window_bounds = array<i64: 8, 256>}]} {
    %c0 = arith.constant 0 : index
    %c0_0 = arith.constant 0 : index
    %0 = vector.load %arg1[%c0, %c0_0] : memref<8x128xf32, #tpu.memory_space<vmem>>, vector<8x128xf32>
    %1 = arith.truncf %0 : vector<8x128xf32> to vector<8x128xbf16>
    %c0_1 = arith.constant 0 : index
    %c0_2 = arith.constant 0 : index
    %2 = vector.load %arg4[%c0_1, %c0_2] : memref<1x1024xf32, #tpu.memory_space<vmem>>, vector<1x256xf32>
    %c0_3 = arith.constant 0 : index
    %c256 = arith.constant 256 : index
    %3 = vector.load %arg4[%c0_3, %c256] : memref<1x1024xf32, #tpu.memory_space<vmem>>, vector<1x256xf32>
    %c0_4 = arith.constant 0 : index
    %c512 = arith.constant 512 : index
    %4 = vector.load %arg4[%c0_4, %c512] : memref<1x1024xf32, #tpu.memory_space<vmem>>, vector<1x384xf32>
    %c0_5 = arith.constant 0 : index
    %c896 = arith.constant 896 : index
    %5 = vector.load %arg4[%c0_5, %c896] : memref<1x1024xf32, #tpu.memory_space<vmem>>, vector<1x128xf32>
    %c0_6 = arith.constant 0 : index
    %c0_7 = arith.constant 0 : index
    %6 = vector.load %arg2[%c0_6, %c0_7] : memref<128x256xbf16, #tpu.memory_space<vmem>>, vector<128x256xbf16>
    %cst = arith.constant dense<0.000000e+00> : vector<8x256xf32>
    %7 = tpu.matmul %1, %6, %cst {dimension_numbers = #tpu.dot_dimension_numbers<[1], [0], [0], [1], [0, 0, 1, 1], [], []>} : vector<8x128xbf16>, vector<128x256xbf16>, vector<8x256xf32> -> vector<8x256xf32>
    %8 = vector.broadcast %2 : vector<1x256xf32> to vector<8x256xf32>
    %9 = arith.addf %7, %8 : vector<8x256xf32>
    %cst_8 = arith.constant 5.000000e-01 : f32
    %10 = vector.broadcast %cst_8 : f32 to vector<8x256xf32>
    %11 = arith.mulf %10, %9 : vector<8x256xf32>
    %cst_9 = arith.constant 0.707106769 : f32
    %12 = vector.broadcast %cst_9 : f32 to vector<8x256xf32>
    %13 = arith.mulf %9, %12 : vector<8x256xf32>
    %14 = math.erf %13 : vector<8x256xf32>
    %cst_10 = arith.constant 1.000000e+00 : f32
    %15 = vector.broadcast %cst_10 : f32 to vector<8x256xf32>
    %16 = arith.addf %15, %14 : vector<8x256xf32>
    %17 = arith.mulf %11, %16 : vector<8x256xf32>
    %18 = arith.truncf %17 : vector<8x256xf32> to vector<8x256xbf16>
    %c0_11 = arith.constant 0 : index
    %c0_12 = arith.constant 0 : index
    %19 = vector.load %arg3[%c0_11, %c0_12] : memref<256x768xbf16, #tpu.memory_space<vmem>>, vector<256x256xbf16>
    %cst_13 = arith.constant dense<0.000000e+00> : vector<8x256xf32>
    %20 = tpu.matmul %18, %19, %cst_13 {dimension_numbers = #tpu.dot_dimension_numbers<[1], [0], [0], [1], [0, 0, 1, 1], [], []>} : vector<8x256xbf16>, vector<256x256xbf16>, vector<8x256xf32> -> vector<8x256xf32>
    %21 = vector.broadcast %3 : vector<1x256xf32> to vector<8x256xf32>
    %22 = arith.addf %20, %21 : vector<8x256xf32>
    %cst_14 = arith.constant 5.000000e-01 : f32
    %23 = vector.broadcast %cst_14 : f32 to vector<8x256xf32>
    %24 = arith.mulf %23, %22 : vector<8x256xf32>
    %cst_15 = arith.constant 0.707106769 : f32
    %25 = vector.broadcast %cst_15 : f32 to vector<8x256xf32>
    %26 = arith.mulf %22, %25 : vector<8x256xf32>
    %27 = math.erf %26 : vector<8x256xf32>
    %cst_16 = arith.constant 1.000000e+00 : f32
    %28 = vector.broadcast %cst_16 : f32 to vector<8x256xf32>
    %29 = arith.addf %28, %27 : vector<8x256xf32>
    %30 = arith.mulf %24, %29 : vector<8x256xf32>
    %31 = arith.truncf %30 : vector<8x256xf32> to vector<8x256xbf16>
    %c0_17 = arith.constant 0 : index
    %c256_18 = arith.constant 256 : index
    %32 = vector.load %arg3[%c0_17, %c256_18] : memref<256x768xbf16, #tpu.memory_space<vmem>>, vector<256x384xbf16>
    %cst_19 = arith.constant dense<0.000000e+00> : vector<8x384xf32>
    %33 = tpu.matmul %31, %32, %cst_19 {dimension_numbers = #tpu.dot_dimension_numbers<[1], [0], [0], [1], [0, 0, 1, 1], [], []>} : vector<8x256xbf16>, vector<256x384xbf16>, vector<8x384xf32> -> vector<8x384xf32>
    %34 = vector.broadcast %4 : vector<1x384xf32> to vector<8x384xf32>
    %35 = arith.addf %33, %34 : vector<8x384xf32>
    %36 = vector.extract_strided_slice %35 {offsets = [0, 0], sizes = [8, 128], strides = [1, 1]} : vector<8x384xf32> to vector<8x128xf32>
    %37 = vector.extract_strided_slice %35 {offsets = [0, 128], sizes = [8, 256], strides = [1, 1]} : vector<8x384xf32> to vector<8x256xf32>
    %cst_20 = arith.constant 5.000000e-01 : f32
    %38 = vector.broadcast %cst_20 : f32 to vector<8x256xf32>
    %39 = arith.mulf %38, %37 : vector<8x256xf32>
    %cst_21 = arith.constant 0.707106769 : f32
    %40 = vector.broadcast %cst_21 : f32 to vector<8x256xf32>
    %41 = arith.mulf %37, %40 : vector<8x256xf32>
    %42 = math.erf %41 : vector<8x256xf32>
    %cst_22 = arith.constant 1.000000e+00 : f32
    %43 = vector.broadcast %cst_22 : f32 to vector<8x256xf32>
    %44 = arith.addf %43, %42 : vector<8x256xf32>
    %45 = arith.mulf %39, %44 : vector<8x256xf32>
    %cst_23 = arith.constant dense<0xFF800000> : vector<8xf32>
    %46 = vector.multi_reduction <maximumf>, %36, %cst_23 [1] : vector<8x128xf32> to vector<8xf32>
    %47 = vector.shape_cast %46 : vector<8xf32> to vector<8x1xf32>
    %48 = vector.broadcast %47 : vector<8x1xf32> to vector<8x128xf32>
    %49 = arith.subf %36, %48 : vector<8x128xf32>
    %50 = math.exp %49 : vector<8x128xf32>
    %cst_24 = arith.constant dense<0.000000e+00> : vector<8xf32>
    %51 = vector.multi_reduction <add>, %50, %cst_24 [1] : vector<8x128xf32> to vector<8xf32>
    %52 = vector.shape_cast %51 : vector<8xf32> to vector<8x1xf32>
    %53 = tpu.reciprocal %52 {approx = true} : vector<8x1xf32> -> vector<8x1xf32>
    %54 = vector.broadcast %53 : vector<8x1xf32> to vector<8x128xf32>
    %55 = arith.mulf %50, %54 : vector<8x128xf32>
    %c0_25 = arith.constant 0 : index
    %c0_26 = arith.constant 0 : index
    %56 = vector.load %arg5[%c0_25, %c0_26] : memref<8x256xf32, #tpu.memory_space<vmem>>, vector<8x128xf32>
    tpu.vector_store %arg5[%c0_25, %c0_26], %55 {strides = array<i32>} : memref<8x256xf32, #tpu.memory_space<vmem>>, vector<8x128xf32>,
    %57 = arith.truncf %45 : vector<8x256xf32> to vector<8x256xbf16>
    %c0_27 = arith.constant 0 : index
    %c640 = arith.constant 640 : index
    %58 = vector.load %arg3[%c0_27, %c640] : memref<256x768xbf16, #tpu.memory_space<vmem>>, vector<256x128xbf16>
    %cst_28 = arith.constant dense<0.000000e+00> : vector<8x128xf32>
    %59 = tpu.matmul %57, %58, %cst_28 {dimension_numbers = #tpu.dot_dimension_numbers<[1], [0], [0], [1], [0, 0, 1, 1], [], []>} : vector<8x256xbf16>, vector<256x128xbf16>, vector<8x128xf32> -> vector<8x128xf32>
    %60 = vector.broadcast %5 : vector<1x128xf32> to vector<8x128xf32>
    %61 = arith.addf %59, %60 : vector<8x128xf32>
    %62 = arith.negf %61 : vector<8x128xf32>
    %63 = math.exp %62 : vector<8x128xf32>
    %cst_29 = arith.constant 1.000000e+00 : f32
    %64 = vector.broadcast %cst_29 : f32 to vector<8x128xf32>
    %65 = arith.addf %64, %63 : vector<8x128xf32>
    %66 = arith.divf %64, %65 : vector<8x128xf32>
    %c0_30 = arith.constant 0 : index
    %c128 = arith.constant 128 : index
    %67 = vector.load %arg5[%c0_30, %c128] : memref<8x256xf32, #tpu.memory_space<vmem>>, vector<8x128xf32>
    tpu.vector_store %arg5[%c0_30, %c128], %66 {strides = array<i32>} : memref<8x256xf32, #tpu.memory_space<vmem>>, vector<8x128xf32>,
    return
  }
  func.func @transform_0(%arg0: i32) -> (i32, i32) {
    %c0_i32 = arith.constant 0 : i32
    %c0_i32_0 = arith.constant 0 : i32
    return %arg0, %c0_i32 : i32, i32
  }
  func.func @transform_1(%arg0: i32) -> (i32, i32) {
    %c0_i32 = arith.constant 0 : i32
    %c0_i32_0 = arith.constant 0 : i32
    %c0_i32_1 = arith.constant 0 : i32
    return %c0_i32, %c0_i32_0 : i32, i32
  }
  func.func @transform_2(%arg0: i32) -> (i32, i32) {
    %c0_i32 = arith.constant 0 : i32
    %c0_i32_0 = arith.constant 0 : i32
    %c0_i32_1 = arith.constant 0 : i32
    return %c0_i32, %c0_i32_0 : i32, i32
  }
  func.func @transform_3(%arg0: i32) -> (i32, i32) {
    %c0_i32 = arith.constant 0 : i32
    %c0_i32_0 = arith.constant 0 : i32
    %c0_i32_1 = arith.constant 0 : i32
    return %c0_i32, %c0_i32_0 : i32, i32
  }
  func.func @transform_4(%arg0: i32) -> (i32, i32) {
    %c0_i32 = arith.constant 0 : i32
    %c0_i32_0 = arith.constant 0 : i32
    return %arg0, %c0_i32 : i32, i32
  }
}

</mosaic_0001>

<bundles_post_ra>
// kernel: mobile_action_forward.1
= control target key start
LH: loop header
LB: loop body
LE: loop exit
PB: predicated region body
PF: predicated region fallthrough
CT: control target
= control target key end

     0   :  { %9 = vsyncpa [#allocation3], 0  ;;  %s1571_s0 = inlined_call_operand.vmem [shape: f32[8,128], index: 0, kind: input, shape index: {}]   ;;  %s1572_s1 = inlined_call_operand.hbm [shape: bf16[128,256], index: 1, kind: input, shape index: {}]   ;;  %s1573_s2 = inlined_call_operand.hbm [shape: bf16[256,768], index: 2, kind: input, shape index: {}]   ;;  %s1574_s3 = inlined_call_operand.vmem [shape: f32[1,1024], index: 3, kind: input, shape index: {}]   ;;  %s1575_s4 = inlined_call_operand.vmem [shape: f32[8,256], index: 4, kind: output, shape index: {}]  }
   0x1   :  { %10 = vsyncpa [#allocation5], 0  ;;  %s1479_s15 = smov [#allocation2]   ;;  %s1431_s19 = scalar_lea.hbm %s1572_s1, 2048 }
   0x2   :  { %s18_s16 = sshll.u32 %s1479_s15, 4  ;;  %p1432_p0 = scmp.ne.s32.totalorder %s1572_s1, %s1431_s19  ;;  %s19_s16 = int_to_ptr.vmem [resolvable:$true] %s18_s16 }
   0x3   :  { %p1435_p1 = scmp.lt.u32.totalorder %s1431_s19, %s1572_s1 }
   0x5   :  { %p1437_p2 = pnand %p1435_p1, %p1432_p0 }
   0x7   :  { %1440 = shalt.err (!%p1437_p2)
}
   0x8   :  { %s1441_s24 = scalar_lea.vmem %s19_s16, 2048  ;;  %p1446_p4 = scmp.lt.s32.totalorder %s19_s16, %s19_s16 }
   0x9   :  { %p1442_p3 = scmp.ne.s32.totalorder %s19_s16, %s1441_s24  ;;  %p1447_p5 = scmp.lt.s32.totalorder %s1441_s24, %s1441_s24 }
   0xb   :  { %p1448_p6 = por %p1447_p5, %p1446_p4 }
   0xd   :  { %p1449_p7 = pnand %p1448_p6, %p1442_p3 }
   0xf   :  { %1452 = shalt.err (!%p1449_p7)
}
  0x10   :  { %s1480_s25 = smov 128   ;;  %s1481_s26 = smov 8  }
  0x11   :  { %24 = dma.hbm_to_vmem [thread:$0]  %s1572_s1, 2048, %s19_s16, [#allocation3], %s1480_s25, %s1480_s25, %s1481_s26  }
  0x12   :  { %s1482_s29 = smov [#allocation4]   ;;  %s1453_s7 = scalar_lea.hbm %s1573_s2, 12288 }
  0x13   :  { %s30_s30 = sshll.u32 %s1482_s29, 4  ;;  %p1454_p8 = scmp.ne.s32.totalorder %s1573_s2, %s1453_s7  ;;  %s31_s30 = int_to_ptr.vmem [resolvable:$true] %s30_s30 }
  0x14   :  { %p1457_p9 = scmp.lt.u32.totalorder %s1453_s7, %s1573_s2 }
  0x16   :  { %p1459_p10 = pnand %p1457_p9, %p1454_p8 }
  0x18   :  { %1462 = shalt.err (!%p1459_p10)
}
  0x19   :  { %s1463_s12 = scalar_lea.vmem %s31_s30, 12288  ;;  %p1468_p12 = scmp.lt.s32.totalorder %s31_s30, %s31_s30 }
  0x1a   :  { %p1464_p11 = scmp.ne.s32.totalorder %s31_s30, %s1463_s12  ;;  %p1469_p13 = scmp.lt.s32.totalorder %s1463_s12, %s1463_s12 }
  0x1c   :  { %p1470_p0 = por %p1469_p13, %p1468_p12 }
  0x1e   :  { %p1471_p1 = pnand %p1470_p0, %p1464_p11 }
  0x20   :  { %1474 = shalt.err (!%p1471_p1)
}
  0x21   :  { %s1483_s1 = smov 384   ;;  %s1484_s13 = smov 24  }
  0x22   :  { %36 = dma.hbm_to_vmem [thread:$0]  %s1573_s2, 12288, %s31_s30, [#allocation5], %s1483_s1, %s1483_s1, %s1484_s13  }
  0x23   :  { %1475 = dma.done.wait [#allocation3], 2048  }
  0x24   :  { %1476 = vsyncadd [#allocation3], 4294965248 }
  0x25   :  { %1477 = dma.done.wait [#allocation5], 12288  }
  0x26   :  { %1478 = vsyncadd [#allocation5], 4294955008  ;;  %v1485_v0 = vmov 0   ;;  %v1259_v1 = vld [vmem:[#allocation2 + $0x4] ss:$8 sps:$4 sm:$0xff]   ;;  %v46_v27 = vld [vmem:[%s1571_s0] sm:$0xff] }
  0x27   :  { %191 = vmatprep.mubr.bf16.mxu0 %v1485_v0  ;;  %v1261_v2 = vld [vmem:[#allocation2] ss:$8 sps:$4 sm:$0xff]   ;;  %159 = vmatprep.subr.bf16.mxu0 %v1259_v1  ;;  %v1262_v3 = vld [vmem:[#allocation2 + $0x14] ss:$8 sps:$4 sm:$0xff]   ;;  %v1264_v4 = vld [vmem:[#allocation2 + $0x10] ss:$8 sps:$4 sm:$0xff]   ;;  %v47_v31 = vpack.c.bf16 %v46_v27, %v46_v27 }
  0x28   :  { %160 = vmatpush1.bf16.msra.mxu0 %v1261_v2  ;;  %v1265_v5 = vld [vmem:[#allocation2 + $0x24] ss:$8 sps:$4 sm:$0xff]   ;;  %v1267_v6 = vld [vmem:[#allocation2 + $0x20] ss:$8 sps:$4 sm:$0xff]   ;;  %v1268_v7 = vld [vmem:[#allocation2 + $0x34] ss:$8 sps:$4 sm:$0xff]  }
  0x29   :  { %161 = vmatprep.subr.bf16.mxu0 %v1262_v3  ;;  %v1270_v8 = vld [vmem:[#allocation2 + $0x30] ss:$8 sps:$4 sm:$0xff]   ;;  %v1271_v9 = vld [vmem:[#allocation2 + $0x44] ss:$8 sps:$4 sm:$0xff]   ;;  %v1273_v13 = vld [vmem:[#allocation2 + $0x40] ss:$8 sps:$4 sm:$0xff]  }
  0x2a   :  { %v1283_v10 = vld [vmem:[#allocation4 + $0x4] ss:$24 sps:$4 sm:$0xff]   ;;  %v1285_v11 = vld [vmem:[#allocation4] ss:$24 sps:$4 sm:$0xff]   ;;  %v1286_v12 = vld [vmem:[#allocation4 + $0x34] ss:$24 sps:$4 sm:$0xff]  }
  0x2b   :  { %415 = vmatprep.subr.bf16.mxu1 %v1283_v10  ;;  %v1288_v14 = vld [vmem:[#allocation4 + $0x30] ss:$24 sps:$4 sm:$0xff]   ;;  %v1289_v15 = vld [vmem:[#allocation4 + $0x64] ss:$24 sps:$4 sm:$0xff]   ;;  %v1291_v18 = vld [vmem:[#allocation4 + $0x60] ss:$24 sps:$4 sm:$0xff]  }
  0x2c   :  { %162 = vmatpush1.bf16.msra.mxu0 %v1264_v4  ;;  %416 = vmatpush1.bf16.msra.mxu1 %v1285_v11  ;;  %v1274_v16 = vld [vmem:[#allocation2 + $0x54] ss:$8 sps:$4 sm:$0xff]   ;;  %v1276_v17 = vld [vmem:[#allocation2 + $0x50] ss:$8 sps:$4 sm:$0xff]   ;;  %v1277_v20 = vld [vmem:[#allocation2 + $0x64] ss:$8 sps:$4 sm:$0xff]  }
  0x2d   :  { %163 = vmatprep.subr.bf16.mxu0 %v1265_v5  ;;  %417 = vmatprep.subr.bf16.mxu1 %v1286_v12  ;;  %v1292_v19 = vld [vmem:[#allocation4 + $0x94] ss:$24 sps:$4 sm:$0xff]   ;;  %v1279_v21 = vld [vmem:[#allocation2 + $0x60] ss:$8 sps:$4 sm:$0xff]   ;;  %v1295_v23 = vld [vmem:[#allocation4 + $0xc4] ss:$24 sps:$4 sm:$0xff]  }
  0x2e   :  { %v1294_v22 = vld [vmem:[#allocation4 + $0x90] ss:$24 sps:$4 sm:$0xff]   ;;  %v1280_v24 = vld [vmem:[#allocation2 + $0x74] ss:$8 sps:$4 sm:$0xff]   ;;  %v1297_v25 = vld [vmem:[#allocation4 + $0xc0] ss:$24 sps:$4 sm:$0xff]  }
  0x2f   :  { %v1282_v26 = vld [vmem:[#allocation2 + $0x70] ss:$8 sps:$4 sm:$0xff]   ;;  %v1298_v28 = vld [vmem:[#allocation4 + $0xf4] ss:$24 sps:$4 sm:$0xff]   ;;  %v1301_v30 = vld [vmem:[#allocation4 + $0x124] ss:$24 sps:$4 sm:$0xff]  }
  0x30   :  { %164 = vmatpush1.bf16.msra.mxu0 %v1267_v6  ;;  %418 = vmatpush1.bf16.msra.mxu1 %v1288_v14  ;;  %v1300_v29 = vld [vmem:[#allocation4 + $0xf0] ss:$24 sps:$4 sm:$0xff]   ;;  %v1303_v32 = vld [vmem:[#allocation4 + $0x120] ss:$24 sps:$4 sm:$0xff]   ;;  %v1304_v33 = vld [vmem:[#allocation4 + $0x154] ss:$24 sps:$4 sm:$0xff]  }
  0x31   :  { %165 = vmatprep.subr.bf16.mxu0 %v1268_v7  ;;  %419 = vmatprep.subr.bf16.mxu1 %v1289_v15  ;;  %v1306_v34 = vld [vmem:[#allocation4 + $0x150] ss:$24 sps:$4 sm:$0xff]   ;;  %v1307_v35 = vld [vmem:[#allocation4 + $0x184] ss:$24 sps:$4 sm:$0xff]   ;;  %v1309_v36 = vld [vmem:[#allocation4 + $0x180] ss:$24 sps:$4 sm:$0xff]  }
  0x32   :  { %v1310_v37 = vld [vmem:[#allocation4 + $0x1b4] ss:$24 sps:$4 sm:$0xff]   ;;  %v1312_v38 = vld [vmem:[#allocation4 + $0x1b0] ss:$24 sps:$4 sm:$0xff]   ;;  %v1313_v39 = vld [vmem:[#allocation4 + $0x1e4] ss:$24 sps:$4 sm:$0xff]  }
  0x33   :  { %v1315_v40 = vld [vmem:[#allocation4 + $0x1e0] ss:$24 sps:$4 sm:$0xff]   ;;  %v1316_v41 = vld [vmem:[#allocation4 + $0x214] ss:$24 sps:$4 sm:$0xff]   ;;  %v1318_v42 = vld [vmem:[#allocation4 + $0x210] ss:$24 sps:$4 sm:$0xff]  }
  0x34   :  { %166 = vmatpush1.bf16.msra.mxu0 %v1270_v8  ;;  %420 = vmatpush1.bf16.msra.mxu1 %v1291_v18  ;;  %v1319_v43 = vld [vmem:[#allocation4 + $0x244] ss:$24 sps:$4 sm:$0xff]   ;;  %v1321_v44 = vld [vmem:[#allocation4 + $0x240] ss:$24 sps:$4 sm:$0xff]   ;;  %v1322_v45 = vld [vmem:[#allocation4 + $0x274] ss:$24 sps:$4 sm:$0xff]   ;;  %v69_v8 = vlaneseq }
  0x35   :  { %167 = vmatprep.subr.bf16.mxu0 %v1271_v9  ;;  %421 = vmatprep.subr.bf16.mxu1 %v1292_v19  ;;  %v1324_v46 = vld [vmem:[#allocation4 + $0x270] ss:$24 sps:$4 sm:$0xff]   ;;  %v1325_v47 = vld [vmem:[#allocation4 + $0x2a4] ss:$24 sps:$4 sm:$0xff]   ;;  %v1327_v48 = vld [vmem:[#allocation4 + $0x2a0] ss:$24 sps:$4 sm:$0xff]  }
  0x36   :  { %v1328_v49 = vld [vmem:[#allocation4 + $0x2d4] ss:$24 sps:$4 sm:$0xff]   ;;  %v1330_v50 = vld [vmem:[#allocation4 + $0x2d0] ss:$24 sps:$4 sm:$0xff]   ;;  %v1538_v9 = vshrl.u32 %v69_v8, 7 }
  0x37   :  { %v1331_v51 = vld [vmem:[#allocation4 + $0x8] ss:$24 sps:$4 sm:$0xff]   ;;  %v1333_v52 = vld [vmem:[#allocation4 + $0xc] ss:$24 sps:$4 sm:$0xff]   ;;  %v1336_v53 = vld [vmem:[#allocation4 + $0x3c] ss:$24 sps:$4 sm:$0xff]  }
  0x38   :  { %168 = vmatpush1.bf16.msra.mxu0 %v1273_v13  ;;  %422 = vmatpush1.bf16.msra.mxu1 %v1294_v22  ;;  %v1334_v54 = vld [vmem:[#allocation4 + $0x38] ss:$24 sps:$4 sm:$0xff]   ;;  %v1339_v55 = vld [vmem:[#allocation4 + $0x6c] ss:$24 sps:$4 sm:$0xff]   ;;  %v1337_v57 = vld [vmem:[#allocation4 + $0x68] ss:$24 sps:$4 sm:$0xff]  }
  0x39   :  { %169 = vmatprep.subr.bf16.mxu0 %v1274_v16  ;;  %423 = vmatprep.subr.bf16.mxu1 %v1295_v23  ;;  %v1358_v56 = vld [vmem:[#allocation4 + $0x190] ss:$24 sps:$4 sm:$0xff]   ;;  %v1342_v58 = vld [vmem:[#allocation4 + $0x9c] ss:$24 sps:$4 sm:$0xff]   ;;  %v1345_v60 = vld [vmem:[#allocation4 + $0xcc] ss:$24 sps:$4 sm:$0xff]  }
  0x3a   :  { %v1340_v59 = vld [vmem:[#allocation4 + $0x98] ss:$24 sps:$4 sm:$0xff]   ;;  %v1343_v61 = vld [vmem:[#allocation4 + $0xc8] ss:$24 sps:$4 sm:$0xff]   ;;  %v1348_v62 = vld [vmem:[#allocation4 + $0xfc] ss:$24 sps:$4 sm:$0xff]  }
  0x3b   :  { %v1346_v63 = vld [vmem:[#allocation4 + $0xf8] ss:$24 sps:$4 sm:$0xff]   ;;  %v1351_v0 = vld [vmem:[#allocation4 + $0x12c] ss:$24 sps:$4 sm:$0xff]   ;;  %v1349_v1 = vld [vmem:[#allocation4 + $0x128] ss:$24 sps:$4 sm:$0xff]  }
  0x3c   :  { %170 = vmatpush1.bf16.msra.mxu0 %v1276_v17  ;;  %424 = vmatpush1.bf16.msra.mxu1 %v1297_v25  ;;  %v1354_v2 = vld [vmem:[#allocation4 + $0x15c] ss:$24 sps:$4 sm:$0xff]   ;;  %v1352_v3 = vld [vmem:[#allocation4 + $0x158] ss:$24 sps:$4 sm:$0xff]   ;;  %v1357_v4 = vld [vmem:[#allocation4 + $0x18c] ss:$24 sps:$4 sm:$0xff]  }
  0x3d   :  { %171 = vmatprep.subr.bf16.mxu0 %v1277_v20  ;;  %425 = vmatprep.subr.bf16.mxu1 %v1298_v28  ;;  %v1355_v5 = vld [vmem:[#allocation4 + $0x188] ss:$24 sps:$4 sm:$0xff]   ;;  %v1362_v6 = vld [vmem:[#allocation4 + $0x1bc] ss:$24 sps:$4 sm:$0xff]   ;;  %v1360_v7 = vld [vmem:[#allocation4 + $0x1b8] ss:$24 sps:$4 sm:$0xff]  }
  0x3e   :  { %v1541_v10 = vsub.s32 0, %v1538_v9  ;;  %v48_v11 = vld [vmem:[%s1574_s3] sm:$0x3]  ;;  %v1547_v12 = vsub.s32 1, %v1538_v9 }
  0x40   :  { %172 = vmatpush1.bf16.msra.mxu0 %v1279_v21  ;;  %426 = vmatpush1.bf16.msra.mxu1 %v1300_v29  ;;  %v72_v13 = vrot.slane %v48_v11, %v1541_v10  ;;  %v76_v14 = vrot.slane %v48_v11, %v1547_v12 }
  0x41   :  { %173 = vmatprep.subr.bf16.mxu0 %v1280_v24  ;;  %427 = vmatprep.subr.bf16.mxu1 %v1301_v30 }
  0x44   :  { %174 = vmatpush1.bf16.msra.mxu0 %v1282_v26  ;;  %428 = vmatpush1.bf16.msra.mxu1 %v1303_v32  ;;  %v1359_v32 = vld [vmem:[#allocation4 + $0x10] ss:$24 sps:$4 sm:$0xff]  }
  0x45   :  { %429 = vmatprep.subr.bf16.mxu1 %v1304_v33  ;;  %804 = vmatprep.subr.bf16.mxu0 %v1333_v52  ;;  %v1387_v52 = vld [vmem:[#allocation4 + $0x2ac] ss:$24 sps:$4 sm:$0xff]  }
  0x47   :  { %192 = vmatmul.mubr.bf16.vlgmr.msra.gmra.mrb[0].mxu0 %v47_v31 }
  0x48   :  { %430 = vmatpush1.bf16.msra.mxu1 %v1306_v34  ;;  %805 = vmatpush1.bf16.msra.mxu0 %v1331_v51  ;;  %v1363_v34 = vld [vmem:[#allocation4 + $0x1c0] ss:$24 sps:$4 sm:$0xff]  }
  0x49   :  { %431 = vmatprep.subr.bf16.mxu1 %v1307_v35  ;;  %806 = vmatprep.subr.bf16.mxu0 %v1336_v53  ;;  %v1364_v35 = vld [vmem:[#allocation4 + $0x40] ss:$24 sps:$4 sm:$0xff]   ;;  %v1388_v53 = vld [vmem:[#allocation4 + $0x2b0] ss:$24 sps:$4 sm:$0xff]  }
  0x4a   :  { %v1384_v51 = vld [vmem:[#allocation4 + $0x100] ss:$24 sps:$4 sm:$0xff]  }
  0x4c   :  { %432 = vmatpush1.bf16.msra.mxu1 %v1309_v36  ;;  %807 = vmatpush1.bf16.msra.mxu0 %v1334_v54  ;;  %v1367_v36 = vld [vmem:[#allocation4 + $0x1ec] ss:$24 sps:$4 sm:$0xff]   ;;  %v1385_v54 = vld [vmem:[#allocation4 + $0x2a8] ss:$24 sps:$4 sm:$0xff]  }
  0x4d   :  { %433 = vmatprep.subr.bf16.mxu1 %v1310_v37  ;;  %808 = vmatprep.subr.bf16.mxu0 %v1339_v55  ;;  %v1368_v37 = vld [vmem:[#allocation4 + $0x1f0] ss:$24 sps:$4 sm:$0xff]  }
  0x4e   :  { %v1389_v55 = vld [vmem:[#allocation4 + $0x130] ss:$24 sps:$4 sm:$0xff]  }
  0x50   :  { %434 = vmatpush1.bf16.msra.mxu1 %v1312_v38  ;;  %809 = vmatpush1.bf16.msra.mxu0 %v1337_v57  ;;  %v1365_v38 = vld [vmem:[#allocation4 + $0x1e8] ss:$24 sps:$4 sm:$0xff]  }
  0x51   :  { %435 = vmatprep.subr.bf16.mxu1 %v1313_v39  ;;  %810 = vmatprep.subr.bf16.mxu0 %v1342_v58  ;;  %v1369_v39 = vld [vmem:[#allocation4 + $0x70] ss:$24 sps:$4 sm:$0xff]   ;;  %v1393_v57 = vld [vmem:[#allocation4 + $0x2e0] ss:$24 sps:$4 sm:$0xff]  }
  0x52   :  { %v1390_v58 = vld [vmem:[#allocation4 + $0x2d8] ss:$24 sps:$4 sm:$0xff]  }
  0x54   :  { %436 = vmatpush1.bf16.msra.mxu1 %v1315_v40  ;;  %811 = vmatpush1.bf16.msra.mxu0 %v1340_v59  ;;  %v1372_v40 = vld [vmem:[#allocation4 + $0x21c] ss:$24 sps:$4 sm:$0xff]   ;;  %v1394_v59 = vld [vmem:[#allocation4 + $0x160] ss:$24 sps:$4 sm:$0xff]  }
  0x55   :  { %437 = vmatprep.subr.bf16.mxu1 %v1316_v41  ;;  %812 = vmatprep.subr.bf16.mxu0 %v1345_v60  ;;  %v1373_v41 = vld [vmem:[#allocation4 + $0x220] ss:$24 sps:$4 sm:$0xff]   ;;  %v1395_v60 = vld [vmem:[#allocation4 + $0x194] ss:$24 sps:$4 sm:$0xff]  }
  0x58   :  { %438 = vmatpush1.bf16.msra.mxu1 %v1318_v42  ;;  %813 = vmatpush1.bf16.msra.mxu0 %v1343_v61  ;;  %v1370_v42 = vld [vmem:[#allocation4 + $0x218] ss:$24 sps:$4 sm:$0xff]  }
  0x59   :  { %439 = vmatprep.subr.bf16.mxu1 %v1319_v43  ;;  %814 = vmatprep.subr.bf16.mxu0 %v1348_v62  ;;  %v1374_v43 = vld [vmem:[#allocation4 + $0xa0] ss:$24 sps:$4 sm:$0xff]  }
  0x5a   :  { %v49_v61 = vld [vmem:[%s1574_s3 + $0x2] sm:$0x3] }
  0x5b   :  { %v248_v62 = vrot.slane %v49_v61, %v1541_v10 }
  0x5c   :  { %440 = vmatpush1.bf16.msra.mxu1 %v1321_v44  ;;  %815 = vmatpush1.bf16.msra.mxu0 %v1346_v63  ;;  %v1377_v44 = vld [vmem:[#allocation4 + $0x24c] ss:$24 sps:$4 sm:$0xff]   ;;  %v252_v63 = vrot.slane %v49_v61, %v1547_v12 }
  0x5d   :  { %441 = vmatprep.subr.bf16.mxu1 %v1322_v45  ;;  %816 = vmatprep.subr.bf16.mxu0 %v1351_v0  ;;  %v1378_v45 = vld [vmem:[#allocation4 + $0x250] ss:$24 sps:$4 sm:$0xff]  }
  0x60   :  { %442 = vmatpush1.bf16.msra.mxu1 %v1324_v46  ;;  %817 = vmatpush1.bf16.msra.mxu0 %v1349_v1  ;;  %v1375_v46 = vld [vmem:[#allocation4 + $0x248] ss:$24 sps:$4 sm:$0xff]  }
  0x61   :  { %443 = vmatprep.subr.bf16.mxu1 %v1325_v47  ;;  %818 = vmatprep.subr.bf16.mxu0 %v1354_v2  ;;  %v1379_v47 = vld [vmem:[#allocation4 + $0xd0] ss:$24 sps:$4 sm:$0xff]  }
  0x64   :  { %444 = vmatpush1.bf16.msra.mxu1 %v1327_v48  ;;  %819 = vmatpush1.bf16.msra.mxu0 %v1352_v3  ;;  %v1382_v48 = vld [vmem:[#allocation4 + $0x27c] ss:$24 sps:$4 sm:$0xff]  }
  0x65   :  { %445 = vmatprep.subr.bf16.mxu1 %v1328_v49  ;;  %820 = vmatprep.subr.bf16.mxu0 %v1357_v4  ;;  %v1383_v49 = vld [vmem:[#allocation4 + $0x280] ss:$24 sps:$4 sm:$0xff]  }
  0x68   :  { %446 = vmatpush1.bf16.msra.mxu1 %v1330_v50  ;;  %821 = vmatpush1.bf16.msra.mxu0 %v1355_v5  ;;  %v1380_v50 = vld [vmem:[#allocation4 + $0x278] ss:$24 sps:$4 sm:$0xff]  }
  0x69   :  { %1208 = vmatprep.subr.bf16.mxu1 %v1358_v56  ;;  %822 = vmatprep.subr.bf16.mxu0 %v1362_v6  ;;  %v1392_v56 = vld [vmem:[#allocation4 + $0x2dc] ss:$24 sps:$4 sm:$0xff]  }
  0x6c   :  { %823 = vmatpush1.bf16.msra.mxu0 %v1360_v7 }
  0x6d   :  { %824 = vmatprep.subr.bf16.mxu0 %v1367_v36  ;;  %v50_v36 = vld [vmem:[%s1574_s3 + $0x4] sm:$0x7] }
  0x70   :  { %825 = vmatpush1.bf16.msra.mxu0 %v1365_v38  ;;  %v536_v38 = vrot.slane %v50_v36, %v1541_v10 }
  0x71   :  { %826 = vmatprep.subr.bf16.mxu0 %v1372_v40 }
  0x74   :  { %827 = vmatpush1.bf16.msra.mxu0 %v1370_v42 }
  0x75   :  { %828 = vmatprep.subr.bf16.mxu0 %v1377_v44 }
  0x78   :  { %829 = vmatpush1.bf16.msra.mxu0 %v1375_v46 }
  0x79   :  { %830 = vmatprep.subr.bf16.mxu0 %v1382_v48 }
  0x7c   :  { %831 = vmatpush1.bf16.msra.mxu0 %v1380_v50 }
  0x7d   :  { %832 = vmatprep.subr.bf16.mxu0 %v1387_v52 }
  0x80   :  { %833 = vmatpush1.bf16.msra.mxu0 %v1385_v54 }
  0x81   :  { %834 = vmatprep.subr.bf16.mxu0 %v1392_v56 }
  0x84   :  { %835 = vmatpush1.bf16.msra.mxu0 %v1390_v58 }
  0x85   :  { %1230 = vmatprep.subr.bf16.mxu0 %v1395_v60 }
 0x11a   :  { %v193_v15 = vpop.f32.mrb[0].mxu0 }
 0x11b   :  { %v194_v16 = vadd.f32 %v193_v15, %v72_v13  ;;  %v195_v17 = vpop.f32.mrb[1].mxu0 }
 0x11c   :  { %v196_v18 = vadd.f32 %v195_v17, %v76_v14  ;;  %v197_v19 = vpop.f32.mrb[2].mxu0 }
 0x11d   :  { %v202_v20 = vmul.f32 0.70710677, %v194_v16  ;;  %v198_v21 = vpop.f32.mrb[3].mxu0  ;;  %v200_v25 = vmul.f32 0.5, %v194_v16 }
 0x11e   :  { %v203_v22 = vmul.f32 0.70710677, %v196_v18  ;;  %v201_v27 = vmul.f32 0.5, %v196_v18 }
 0x11f   :  { %1411 = verf.f32 %v202_v20  ;;  %v1396_v20 = vld [vmem:[#allocation4 + $0x14] ss:$24 sps:$4 sm:$0xff]  }
 0x120   :  { %1413 = verf.f32 %v203_v22  ;;  %v1397_v22 = vld [vmem:[#allocation4 + $0x1c4] ss:$24 sps:$4 sm:$0xff]  }
 0x129   :  { %v1412_v23 = vpop.eup %1411 }
 0x12a   :  { %v1414_v24 = vpop.eup %1413  ;;  %v206_v26 = vadd.f32 1.0, %v1412_v23  ;;  %v1398_v23 = vld [vmem:[#allocation4 + $0x44] ss:$24 sps:$4 sm:$0xff]  }
 0x12b   :  { %v207_v28 = vadd.f32 1.0, %v1414_v24  ;;  %v1399_v24 = vld [vmem:[#allocation4 + $0x1f4] ss:$24 sps:$4 sm:$0xff]  }
 0x12c   :  { %v208_v29 = vmul.f32 %v206_v26, %v200_v25  ;;  %v1400_v25 = vld [vmem:[#allocation4 + $0x74] ss:$24 sps:$4 sm:$0xff]   ;;  %v1401_v26 = vld [vmem:[#allocation4 + $0x224] ss:$24 sps:$4 sm:$0xff]  }
 0x12d   :  { %v209_v30 = vmul.f32 %v207_v28, %v201_v27  ;;  %v1402_v27 = vld [vmem:[#allocation4 + $0xa4] ss:$24 sps:$4 sm:$0xff]   ;;  %v1403_v28 = vld [vmem:[#allocation4 + $0x254] ss:$24 sps:$4 sm:$0xff]  }
 0x12e   :  { %v210_v33 = vpack.c.bf16 %v208_v29, %v208_v29  ;;  %v1404_v29 = vld [vmem:[#allocation4 + $0xd4] ss:$24 sps:$4 sm:$0xff]  }
 0x12f   :  { %v211_v31 = vpack.c.bf16 %v209_v30, %v209_v30  ;;  %v1405_v30 = vld [vmem:[#allocation4 + $0x284] ss:$24 sps:$4 sm:$0xff]  }
 0x131   :  { %447 = vmatprep.mubr.bf16.mxu1 %v211_v31  ;;  %v1406_v31 = vld [vmem:[#allocation4 + $0x104] ss:$24 sps:$4 sm:$0xff]  }
 0x132   :  { %448 = vmatmul.mubr.bf16.vlgmr.msra.gmra.mrb[0].mxu1 %v210_v33  ;;  %v1408_v33 = vld [vmem:[#allocation4 + $0x134] ss:$24 sps:$4 sm:$0xff]  }
 0x133   :  { %1209 = vmatpush3.bf16.msra.mxu1 %v1359_v32  ;;  %v1407_v32 = vld [vmem:[#allocation4 + $0x2b4] ss:$24 sps:$4 sm:$0xff]  }
 0x134   :  { %1210 = vmatprep.subr.bf16.mxu1 %v1363_v34  ;;  %v1409_v34 = vld [vmem:[#allocation4 + $0x2e4] ss:$24 sps:$4 sm:$0xff]  }
 0x137   :  { %1211 = vmatpush3.bf16.msra.mxu1 %v1364_v35  ;;  %v1410_v35 = vld [vmem:[#allocation4 + $0x164] ss:$24 sps:$4 sm:$0xff]  }
 0x138   :  { %1212 = vmatprep.subr.bf16.mxu1 %v1368_v37  ;;  %v543_v37 = vsub.s32 2, %v1538_v9 }
 0x13a   :  { %v544_v42 = vrot.slane %v50_v36, %v543_v37 }
 0x13b   :  { %1213 = vmatpush3.bf16.msra.mxu1 %v1369_v39  ;;  %v540_v39 = vrot.slane %v50_v36, %v1547_v12 }
 0x13c   :  { %1214 = vmatprep.subr.bf16.mxu1 %v1373_v41 }
 0x13f   :  { %1215 = vmatpush3.bf16.msra.mxu1 %v1374_v43 }
 0x140   :  { %1216 = vmatprep.subr.bf16.mxu1 %v1378_v45 }
 0x143   :  { %1217 = vmatpush3.bf16.msra.mxu1 %v1379_v47 }
 0x144   :  { %1218 = vmatprep.subr.bf16.mxu1 %v1383_v49 }
 0x147   :  { %1219 = vmatpush3.bf16.msra.mxu1 %v1384_v51 }
 0x148   :  { %1220 = vmatprep.subr.bf16.mxu1 %v1388_v53 }
 0x14b   :  { %1221 = vmatpush3.bf16.msra.mxu1 %v1389_v55 }
 0x14c   :  { %1222 = vmatprep.subr.bf16.mxu1 %v1393_v57 }
 0x14f   :  { %1223 = vmatpush3.bf16.msra.mxu1 %v1394_v59 }
 0x205   :  { %v449_v0 = vpop.f32.mrb[0].mxu1 }
 0x206   :  { %v450_v1 = vadd.f32 %v449_v0, %v248_v62  ;;  %v451_v2 = vpop.f32.mrb[1].mxu1 }
 0x207   :  { %v452_v3 = vadd.f32 %v451_v2, %v252_v63  ;;  %v453_v4 = vpop.f32.mrb[2].mxu1 }
 0x208   :  { %v458_v5 = vmul.f32 0.70710677, %v450_v1  ;;  %v454_v6 = vpop.f32.mrb[3].mxu1  ;;  %v456_v13 = vmul.f32 0.5, %v450_v1 }
 0x209   :  { %v459_v7 = vmul.f32 0.70710677, %v452_v3  ;;  %v457_v15 = vmul.f32 0.5, %v452_v3  ;;  %v1190_v3 = vld [vmem:[%s1574_s3 + $0x7] ss:$0 sm:$0xff] }
 0x20a   :  { %1415 = verf.f32 %v458_v5 }
 0x20b   :  { %1417 = verf.f32 %v459_v7 }
 0x214   :  { %v1416_v8 = vpop.eup %1415 }
 0x215   :  { %v1418_v11 = vpop.eup %1417  ;;  %v462_v14 = vadd.f32 1.0, %v1416_v8 }
 0x216   :  { %v463_v16 = vadd.f32 1.0, %v1418_v11 }
 0x217   :  { %v464_v17 = vmul.f32 %v462_v14, %v456_v13 }
 0x218   :  { %v465_v18 = vmul.f32 %v463_v16, %v457_v15 }
 0x219   :  { %v466_v21 = vpack.c.bf16 %v464_v17, %v464_v17 }
 0x21a   :  { %v467_v19 = vpack.c.bf16 %v465_v18, %v465_v18 }
 0x21c   :  { %836 = vmatprep.mubr.bf16.mxu0 %v467_v19  ;;  %877 = vmatprep.mubr.bf16.mxu1 %v467_v19 }
 0x21d   :  { %837 = vmatmul.mubr.bf16.vlgmr.msra.gmra.mrb[4].mxu0 %v466_v21  ;;  %878 = vmatmul.mubr.bf16.vlgmr.msra.gmra.mrb[4].mxu1 %v466_v21 }
 0x21e   :  { %1231 = vmatpush3.bf16.msra.mxu0 %v1396_v20 }
 0x21f   :  { %1232 = vmatprep.subr.bf16.mxu0 %v1397_v22 }
 0x222   :  { %1233 = vmatpush3.bf16.msra.mxu0 %v1398_v23 }
 0x223   :  { %1234 = vmatprep.subr.bf16.mxu0 %v1399_v24 }
 0x226   :  { %1235 = vmatpush3.bf16.msra.mxu0 %v1400_v25 }
 0x227   :  { %1236 = vmatprep.subr.bf16.mxu0 %v1401_v26 }
 0x22a   :  { %1237 = vmatpush3.bf16.msra.mxu0 %v1402_v27 }
 0x22b   :  { %1238 = vmatprep.subr.bf16.mxu0 %v1403_v28 }
 0x22e   :  { %1239 = vmatpush3.bf16.msra.mxu0 %v1404_v29 }
 0x22f   :  { %1240 = vmatprep.subr.bf16.mxu0 %v1405_v30 }
 0x232   :  { %1241 = vmatpush3.bf16.msra.mxu0 %v1406_v31 }
 0x233   :  { %1242 = vmatprep.subr.bf16.mxu0 %v1407_v32 }
 0x236   :  { %1243 = vmatpush3.bf16.msra.mxu0 %v1408_v33 }
 0x237   :  { %1244 = vmatprep.subr.bf16.mxu0 %v1409_v34 }
 0x23a   :  { %1245 = vmatpush3.bf16.msra.mxu0 %v1410_v35 }
 0x2f0   :  { %v838_v40 = vpop.f32.mrb[4].mxu0  ;;  %v1224_v41 = vpop.f32.mrb[4].mxu1 }
 0x2f1   :  { %v839_v43 = vadd.f32 %v838_v40, %v536_v38  ;;  %v840_v44 = vpop.f32.mrb[5].mxu0  ;;  %v1225_v45 = vpop.f32.mrb[5].mxu1 }
 0x2f2   :  { %v841_v46 = vadd.f32 %v840_v44, %v540_v39  ;;  %v1226_v47 = vadd.f32 %v1225_v45, %v1224_v41  ;;  %v842_v48 = vpop.f32.mrb[6].mxu0  ;;  %v1227_v49 = vpop.f32.mrb[6].mxu1 }
 0x2f3   :  { %v843_v50 = vpop.f32.mrb[7].mxu0  ;;  %v1228_v51 = vpop.f32.mrb[7].mxu1  ;;  %895 = vmax.xlane.f32.xlu0 %v839_v43 }
 0x2f4   :  { %v887_v52 = vmul.f32 0.70710677, %v841_v46  ;;  %v880_v53 = vadd.f32 %v1226_v47, %v544_v42  ;;  %v885_v55 = vmul.f32 0.5, %v841_v46 }
 0x2f6   :  { %1419 = verf.f32 %v887_v52  ;;  %v888_v9 = vmul.f32 0.70710677, %v880_v53  ;;  %v886_v56 = vmul.f32 0.5, %v880_v53 }
 0x2f8   :  { %1421 = verf.f32 %v888_v9 }
 0x300   :  { %v1420_v10 = vpop.eup %1419 }
 0x301   :  { %v891_v12 = vadd.f32 1.0, %v1420_v10 }
 0x302   :  { %v1422_v54 = vpop.eup %1421 }
 0x303   :  { %v892_v57 = vadd.f32 1.0, %v1422_v54  ;;  %v893_v58 = vmul.f32 %v891_v12, %v885_v55 }
 0x305   :  { %v894_v59 = vmul.f32 %v892_v57, %v886_v56  ;;  %v905_v61 = vpack.c.bf16 %v893_v58, %v893_v58 }
 0x307   :  { %v906_v60 = vpack.c.bf16 %v894_v59, %v894_v59 }
 0x309   :  { %1073 = vmatprep.mubr.bf16.mxu0 %v906_v60 }
 0x30a   :  { %1074 = vmatmul.mubr.bf16.vlgmr.msra.gmra.mrb[8].mxu0 %v905_v61 }
 0x380   :  { %v896_v62 = vpop.xlane.xlu0 %895 }
 0x381   :  { %v897_v63 = vsub.f32 %v839_v43, %v896_v62 }
 0x383   :  { %v898_v0 = vmul.f32 1.442695, %v897_v63 }
 0x385   :  { %1423 = vpow2.f32 %v898_v0 }
 0x38f   :  { %v1424_v1 = vpop.eup %1423 }
 0x390   :  { %900 = vadd.xlane.f32.xlu0 %v1424_v1 }
 0x3dd   :  { %v1246_v2 = vpop.f32.mrb[8].mxu0 }
 0x3de   :  { %v1247_v4 = vpop.f32.mrb[9].mxu0 }
 0x3df   :  { %v1248_v5 = vadd.f32 %v1247_v4, %v1246_v2  ;;  %v1249_v6 = vpop.f32.mrb[10].mxu0 }
 0x3e0   :  { %v1250_v7 = vpop.f32.mrb[11].mxu0 }
 0x3e1   :  { %v1076_v8 = vadd.f32 %v1248_v5, %v1190_v3 }
 0x3e3   :  { %v1207_v11 = vmul.f32 -1.442695, %v1076_v8 }
 0x3e5   :  { %1425 = vpow2.f32 %v1207_v11 }
 0x3ef   :  { %v1426_v13 = vpop.eup %1425 }
 0x3f0   :  { %v1084_v14 = vadd.f32 1.0, %v1426_v13 }
 0x3f2   :  { %1427 = vrcp.f32 %v1084_v14 }
 0x3fc   :  { %v1428_v15 = vpop.eup %1427 }
 0x3fd   :  { %1087 = vst [vmem:[%s1575_s4 + $0x8] sm:$0xff] %v1428_v15 }
 0x41d   :  { %v901_v16 = vpop.xlane.xlu0 %900 }
 0x41e   :  { %1429 = vrcp.f32 %v901_v16 }
 0x428   :  { %v1430_v17 = vpop.eup %1429 }
 0x429   :  { %v903_v18 = vmul.f32 %v1430_v17, %v1424_v1 }
 0x42b   :  { %904 = vst [vmem:[%s1575_s4] sm:$0xff] %v903_v18 }
 0x42c   :  { %1092 = vsyncpa [#allocation3], 1 }
 0x42d   :  { %1093 = vsyncpa [#allocation5], 1 }

</bundles_post_ra>
